<compile_context>
chip_gen: v6e
topology: v6e:2x2x1
jax: 0.10.0
libtpu: 0.0.40
codegen_flags: <defaults>
</compile_context>

<pallas_src>
import functools
import math

import jax
import jax.numpy as jnp
from jax import lax
from jax.experimental import pallas as pl
from jax.experimental.pallas import tpu as pltpu

_LN_EPS = 1e-5


# ----------------------------------------------------------------------------
# small helpers
# ----------------------------------------------------------------------------

def _round_up(x, m):
    return ((x + m - 1) // m) * m


def _pick_chunk(T, batch, target_rows=512):
    """Largest divisor c of T so the (c*batch, C) block is sublane-legal
    ((c*batch) % 8 == 0 or c == T) and has <= target_rows rows."""
    best = None
    for c in range(1, T + 1):
        if T % c:
            continue
        rows = c * batch
        if rows % 8 != 0 and c != T:
            continue
        if rows <= target_rows:
            best = c
    return best if best is not None else T


def _pick_htile(H, target=1024):
    """Largest multiple-of-128 divisor of H <= target (else H)."""
    if H <= target:
        return H
    best = None
    t = 128
    while t <= target:
        if H % t == 0:
            best = t
        t += 128
    return best if best is not None else H


def _ln(x, g, b):
    mean = jnp.mean(x, axis=-1, keepdims=True)
    var = jnp.mean(jnp.square(x - mean), axis=-1, keepdims=True)
    return (x - mean) * lax.rsqrt(var + _LN_EPS) * g + b


@functools.lru_cache(maxsize=None)
def _vmem_limit():
    """Generation-aware scoped-VMEM budget (~75% of physical, capped)."""
    try:
        cap = int(pltpu.get_tpu_info().vmem_capacity_bytes)
        return max(32 * 1024 * 1024, min((cap * 3) // 4, 112 * 1024 * 1024))
    except Exception:
        return 48 * 1024 * 1024


@functools.lru_cache(maxsize=None)
def _weight_pipeline_mode():
    """pl.Buffered(1) for grid-constant weight blocks if this jax/Mosaic
    supports and correctly runs single-buffering; None (default) otherwise."""
    try:
        spec = pl.BlockSpec((8, 128), lambda i: (0, 0),
                            pipeline_mode=pl.Buffered(1))

        def _probe(x_ref, o_ref):
            o_ref[...] = x_ref[...] + 1.0

        x = jnp.arange(8 * 128, dtype=jnp.float32).reshape(8, 128)
        y = pl.pallas_call(
            _probe,
            out_shape=jax.ShapeDtypeStruct((16, 128), jnp.float32),
            grid=(2,),
            in_specs=[spec],
            out_specs=pl.BlockSpec((8, 128), lambda i: (i, 0)),
        )(x)
        expect = jnp.concatenate([x + 1.0, x + 1.0], axis=0)
        if bool(jnp.allclose(y, expect)):
            return pl.Buffered(1)
    except Exception:
        pass
    return None


def _const_spec(shape, pmode):
    """BlockSpec whose block never changes across the grid."""
    zeros = (0,) * len(shape)
    index_map = lambda *args: zeros
    if pmode is None:
        return pl.BlockSpec(shape, index_map)
    return pl.BlockSpec(shape, index_map, pipeline_mode=pmode)


# ----------------------------------------------------------------------------
# tiled matmul (embedding / head): bf16 MXU operands, f32 accumulation
# ----------------------------------------------------------------------------

def _matmul_kernel(x_ref, w_ref, o_ref, acc_ref):
    @pl.when(pl.program_id(2) == 0)
    def _():
        acc_ref[...] = jnp.zeros_like(acc_ref)

    acc_ref[...] += jnp.dot(x_ref[...], w_ref[...],
                            preferred_element_type=jnp.float32)

    @pl.when(pl.program_id(2) == pl.num_programs(2) - 1)
    def _():
        o_ref[...] = acc_ref[...]


def linear(x2d, w):
    M, K = x2d.shape
    Kw, N = w.shape
    assert K == Kw
    xb = x2d.astype(jnp.bfloat16)
    wb = w.astype(jnp.bfloat16)

    tm = min(512, _round_up(M, 8))
    tk = min(512, _round_up(K, 128))
    tn = min(512, _round_up(N, 128))
    Mp, Kp, Np = _round_up(M, tm), _round_up(K, tk), _round_up(N, tn)
    if (Mp, Kp) != (M, K):
        xb = jnp.pad(xb, ((0, Mp - M), (0, Kp - K)))
    if (Kp, Np) != (K, N):
        wb = jnp.pad(wb, ((0, Kp - K), (0, Np - N)))

    out = pl.pallas_call(
        _matmul_kernel,
        out_shape=jax.ShapeDtypeStruct((Mp, Np), jnp.float32),
        grid=(Mp // tm, Np // tn, Kp // tk),
        in_specs=[pl.BlockSpec((tm, tk), lambda i, j, k: (i, k)),
                  pl.BlockSpec((tk, tn), lambda i, j, k: (k, j))],
        out_specs=pl.BlockSpec((tm, tn), lambda i, j, k: (i, j)),
        scratch_shapes=[pltpu.VMEM((tm, tn), jnp.float32)],
        compiler_params=pltpu.CompilerParams(
            dimension_semantics=("parallel", "parallel", "arbitrary"),
            vmem_limit_bytes=_vmem_limit()),
    )(xb, wb)
    if (Mp, Np) != (M, N):
        out = out[:M, :N]
    return out


# ----------------------------------------------------------------------------
# channel-mix: ln2 + time-shift + relu^2 MLP (4C tiled) + gate + residual
# params packed rows: [ln2_g, ln2_b, tmk, tmr, lnout_g, lnout_b]
# ----------------------------------------------------------------------------

def _channel_mix_kernel(x_ref, p_ref, wk_ref, wv_ref, wr_ref, o_ref,
                        prev_s, xk_s, r_s, acc_s, *, batch, fuse_ln_out):
    i = pl.program_id(0)
    j = pl.program_id(1)
    nj = pl.num_programs(1)

    @pl.when(jnp.logical_and(i == 0, j == 0))
    def _():
        prev_s[...] = jnp.zeros_like(prev_s)

    @pl.when(j == 0)
    def _():
        x = x_ref[...]                               # (R, C) f32 time-major chunk
        R = x.shape[0]
        p = p_ref[...]
        xn = _ln(x, p[0:1, :], p[1:2, :])            # fused ln2
        # time-shift: rows move down by `batch`; first rows come from previous
        # chunk's last time step (zeros at t == 0).  Staged through xk_s.
        # TODO(synk): replace the store/reload staging with an XLU roll+select
        # once relayout-free row shifts are verified on this Mosaic version.
        xk_s[pl.ds(0, batch), :] = prev_s[...]
        if R > batch:
            xk_s[pl.ds(batch, R - batch), :] = xn[:R - batch, :]
        xx = xk_s[...]
        prev_s[...] = xn[R - batch:, :]              # carry to next chunk
        tmk = p[2:3, :]
        tmr = p[3:4, :]
        # receptance path first (shortest liveness), then stash xk for H-tiles.
        xr = xn * tmr + xx * (1.0 - tmr)
        r = jnp.dot(xr.astype(jnp.bfloat16), wr_ref[...],
                    preferred_element_type=jnp.float32)
        r_s[...] = jax.nn.sigmoid(r)
        xk_s[...] = xn * tmk + xx * (1.0 - tmk)
        acc_s[...] = jnp.zeros_like(acc_s)

    # one 4C-hidden tile per grid step: neither the full (C,4C)/(4C,C) weights
    # nor the (R,4C) f32 k intermediate are ever fully resident in VMEM.
    k = jnp.dot(xk_s[...].astype(jnp.bfloat16), wk_ref[...],
                preferred_element_type=jnp.float32)          # (R, th)
    k = jnp.square(jnp.maximum(k, 0.0))
    acc_s[...] += jnp.dot(k.astype(jnp.bfloat16), wv_ref[...],
                          preferred_element_type=jnp.float32)  # (R, C)

    @pl.when(j == nj - 1)
    def _():
        y = x_ref[...] + r_s[...] * acc_s[...]       # fused residual
        if fuse_ln_out:
            p = p_ref[...]
            y = _ln(y, p[4:5, :], p[5:6, :])         # fused ln_out (last layer)
        o_ref[...] = y


def channel_mix(x_flat, p, T, batch, fuse_ln_out):
    rows, C = x_flat.shape
    H = p['wk'].shape[1]
    chunk = _pick_chunk(T, batch)
    rb = chunk * batch
    th = _pick_htile(H)
    nH = H // th
    wmode = _weight_pipeline_mode()
    return pl.pallas_call(
        functools.partial(_channel_mix_kernel, batch=batch,
                          fuse_ln_out=fuse_ln_out),
        out_shape=jax.ShapeDtypeStruct((rows, C), jnp.float32),
        grid=(T // chunk, nH),
        in_specs=[pl.BlockSpec((rb, C), lambda i, j: (i, 0)),
                  _const_spec((6, C), wmode),
                  pl.BlockSpec((C, th), lambda i, j: (0, j)),
                  pl.BlockSpec((th, C), lambda i, j: (j, 0)),
                  _const_spec((C, C), wmode)],
        out_specs=pl.BlockSpec((rb, C), lambda i, j: (i, 0)),
        scratch_shapes=[pltpu.VMEM((batch, C), jnp.float32),  # prev xn rows
                        pltpu.VMEM((rb, C), jnp.float32),     # xk (also staging)
                        pltpu.VMEM((rb, C), jnp.float32),     # sigmoid(r)
                        pltpu.VMEM((rb, C), jnp.float32)],    # kv accumulator
        compiler_params=pltpu.CompilerParams(
            # i carries prev_s, j carries the kv accumulator -> both sequential
            dimension_semantics=("arbitrary", "arbitrary"),
            vmem_limit_bytes=_vmem_limit()),
    )(x_flat, p['p'], p['wk'], p['wv'], p['wr'])


# ----------------------------------------------------------------------------
# time-mix: (ln0) + ln1 + time-shift + k/v/r proj + WKV recurrence + out + res
# params packed rows: [ln0_g, ln0_b, ln1_g, ln1_b, tmk, tmv, tmr, -exp(td), u]
# ----------------------------------------------------------------------------

def _time_mix_kernel(x_ref, p_ref, wk_ref, wv_ref, wr_ref, wo_ref, o_ref,
                     prev_s, aa_s, bb_s, pp_s, k_s, v_s,
                     *, batch, unroll, fuse_ln0):
    @pl.when(pl.program_id(0) == 0)
    def _():
        prev_s[...] = jnp.zeros_like(prev_s)
        aa_s[...] = jnp.zeros_like(aa_s)
        bb_s[...] = jnp.zeros_like(bb_s)
        pp_s[...] = jnp.full(pp_s.shape, -1e38, jnp.float32)

    x = x_ref[...]                                   # (R, C) f32 time-major chunk
    R = x.shape[0]
    C = x.shape[1]
    p = p_ref[...]
    if fuse_ln0:
        x = _ln(x, p[0:1, :], p[1:2, :])             # fused ln0 (layer 0 only)
    xn = _ln(x, p[2:3, :], p[3:4, :])                # fused ln1

    # time-shift staged through k_s (scratch is reused for k, then y)
    k_s[pl.ds(0, batch), :] = prev_s[...]
    if R > batch:
        k_s[pl.ds(batch, R - batch), :] = xn[:R - batch, :]
    xx = k_s[...]
    prev_s[...] = xn[R - batch:, :]                  # carry to next chunk

    tmk = p[4:5, :]
    tmv = p[5:6, :]
    tmr = p[6:7, :]
    w = p[7:8, :]                                    # -exp(time_decay)
    u = p[8:9, :]                                    # time_first

    # receptance first, then k/v land in scratch so xn/xx die before the loop.
    xr = xn * tmr + xx * (1.0 - tmr)
    sig_r = jax.nn.sigmoid(jnp.dot(xr.astype(jnp.bfloat16), wr_ref[...],
                                   preferred_element_type=jnp.float32))
    k_s[...] = jnp.dot((xn * tmk + xx * (1.0 - tmk)).astype(jnp.bfloat16),
                       wk_ref[...], preferred_element_type=jnp.float32)
    v_s[...] = jnp.dot((xn * tmv + xx * (1.0 - tmv)).astype(jnp.bfloat16),
                       wv_ref[...], preferred_element_type=jnp.float32)

    n_steps = R // batch
    u_b = jnp.broadcast_to(u, (batch, C))            # hoisted broadcasts
    w_b = jnp.broadcast_to(w, (batch, C))

    # WKV recurrence (max-state form of wkv_cuda.cu forward), all f32.
    # 2 transcendentals per step: since p = max(a, b), one of exp(a-p)/exp(b-p)
    # is exactly 1, so compute exp(-|a-b|) once and select.
    # TODO(synk): when batch < 8, fold channel blocks into the sublane dim
    # (packed (8, C*batch/8) step tiles) for up to 8/batch on the serial phase.
    # TODO(synk): on v7x split the recurrence channel dim across both
    # TensorCores (it is elementwise in C and only serial in t).
    def step(t, carry):
        aa, bb, pp = carry                           # each (batch, C)
        off = t * batch
        if batch % 8 == 0:
            off = pl.multiple_of(off, 8)
        kk = k_s[pl.ds(off, batch), :]
        vv = v_s[pl.ds(off, batch), :]
        ww = u_b + kk
        d1 = pp - ww
        e = jnp.exp(-jnp.abs(d1))
        ge1 = d1 >= 0.0
        e1 = jnp.where(ge1, 1.0, e)
        e2 = jnp.where(ge1, e, 1.0)
        k_s[pl.ds(off, batch), :] = (e1 * aa + e2 * vv) * pl.reciprocal(
            e1 * bb + e2, approx=True)               # EUP reciprocal
        ww2 = pp + w_b
        d2 = ww2 - kk
        e_ = jnp.exp(-jnp.abs(d2))
        ge2 = d2 >= 0.0
        f1 = jnp.where(ge2, 1.0, e_)
        f2 = jnp.where(ge2, e_, 1.0)
        return (f1 * aa + f2 * vv, f1 * bb + f2, jnp.maximum(ww2, kk))

    aa, bb, pp = lax.fori_loop(0, n_steps, step,
                               (aa_s[...], bb_s[...], pp_s[...]),
                               unroll=unroll)
    aa_s[...] = aa
    bb_s[...] = bb
    pp_s[...] = pp

    rwkv = sig_r * k_s[...]                          # k_s now holds y
    o_ref[...] = x + jnp.dot(rwkv.astype(jnp.bfloat16), wo_ref[...],
                             preferred_element_type=jnp.float32)


def time_mix(x_flat, p, T, batch, fuse_ln0):
    rows, C = x_flat.shape
    chunk = _pick_chunk(T, batch)
    rb = chunk * batch
    unroll = min(chunk, 8)
    wmode = _weight_pipeline_mode()
    # TODO(synk): for very large C, additionally tile the output-channel dim of
    # wk/wv/wr/wo across a grid axis (analogous to channel_mix's 4C tiling).
    return pl.pallas_call(
        functools.partial(_time_mix_kernel, batch=batch, unroll=unroll,
                          fuse_ln0=fuse_ln0),
        out_shape=jax.ShapeDtypeStruct((rows, C), jnp.float32),
        grid=(T // chunk,),
        in_specs=[pl.BlockSpec((rb, C), lambda i: (i, 0)),
                  _const_spec((9, C), wmode),
                  _const_spec((C, C), wmode),
                  _const_spec((C, C), wmode),
                  _const_spec((C, C), wmode),
                  _const_spec((C, C), wmode)],
        out_specs=pl.BlockSpec((rb, C), lambda i: (i, 0)),
        scratch_shapes=[pltpu.VMEM((batch, C), jnp.float32),  # prev xn rows
                        pltpu.VMEM((batch, C), jnp.float32),  # aa
                        pltpu.VMEM((batch, C), jnp.float32),  # bb
                        pltpu.VMEM((batch, C), jnp.float32),  # pp
                        pltpu.VMEM((rb, C), jnp.float32),     # k (reused as y)
                        pltpu.VMEM((rb, C), jnp.float32)],    # v
        compiler_params=pltpu.CompilerParams(
            # recurrence state carried across T-chunks -> sequential
            dimension_semantics=("arbitrary",),
            vmem_limit_bytes=_vmem_limit()),
    )(x_flat, p['p'], p['wk'], p['wv'], p['wr'], p['wo'])


# ----------------------------------------------------------------------------
# model: parameter init + forward (plain-JAX glue)
# ----------------------------------------------------------------------------

def init_params(key, vocab_size, n_embd, n_layer):
    C = n_embd

    def lin(k, shape, std=0.02):
        # matmul weights stored in bf16 (MXU operands); everything else f32
        return (jax.random.normal(k, shape, jnp.float32) * std).astype(jnp.bfloat16)

    keys = jax.random.split(key, 2 + n_layer)
    params = {
        'emb_w': lin(keys[0], (vocab_size, C), 0.1),         # Linear(vocab -> C)
        'head_w': lin(keys[1], (C, vocab_size * 10), 0.1),   # Linear(C -> vocab*10)
        'blocks': [],
    }

    ones = jnp.ones((1, C), jnp.float32)
    zeros = jnp.zeros((1, C), jnp.float32)
    idx = jnp.arange(C, dtype=jnp.float32)
    xcoord = (idx / C).reshape(1, C)

    for l in range(n_layer):
        bk = jax.random.split(keys[2 + l], 7)
        ratio_0_to_1 = l / (n_layer - 1) if n_layer > 1 else 0.0
        ratio_1_to_almost0 = 1.0 - l / n_layer

        decay_speed = -5.0 + 8.0 * (idx / (C - 1)) ** (0.7 + 1.3 * ratio_0_to_1)
        zigzag = jnp.array([((i + 1) % 3 - 1) * 0.5 for i in range(C)],
                           jnp.float32)
        time_first = (math.log(0.3) + zigzag).reshape(1, C)
        w_neg = (-jnp.exp(decay_speed)).reshape(1, C)        # w = -exp(time_decay)

        att_p = jnp.concatenate([
            ones, zeros,                                     # ln0 (layer 0 only)
            ones, zeros,                                     # ln1
            xcoord ** ratio_1_to_almost0,                    # time_mix_k
            xcoord ** ratio_1_to_almost0 + 0.3 * ratio_0_to_1,  # time_mix_v
            xcoord ** (0.5 * ratio_1_to_almost0),            # time_mix_r
            w_neg, time_first,
        ], axis=0)                                           # (9, C)

        ffn_p = jnp.concatenate([
            ones, zeros,                                     # ln2
            xcoord ** ratio_1_to_almost0,                    # time_mix_k
            xcoord ** ratio_1_to_almost0,                    # time_mix_r
            ones, zeros,                                     # ln_out (last layer)
        ], axis=0)                                           # (6, C)

        params['blocks'].append(dict(
            fuse_ln0=(l == 0),
            fuse_ln_out=(l == n_layer - 1),
            att=dict(p=att_p, wk=lin(bk[0], (C, C)), wv=lin(bk[1], (C, C)),
                     wr=lin(bk[2], (C, C)), wo=lin(bk[3], (C, C))),
            ffn=dict(p=ffn_p, wk=lin(bk[4], (C, 4 * C)),
                     wv=lin(bk[5], (4 * C, C)), wr=lin(bk[6], (C, C))),
        ))
    return params


def block_forward(h, blk, T, batch):
    h = time_mix(h, blk['att'], T, batch, fuse_ln0=blk['fuse_ln0'])
    h = channel_mix(h, blk['ffn'], T, batch, fuse_ln_out=blk['fuse_ln_out'])
    return h


def image_gpt_forward(x, params):
    """x: (B, T, vocab) float32 -> (logits (B, T, vocab*10), loss=None)."""
    B, T, V = x.shape
    # time-major flat layout: row r = t*B + b
    h = jnp.transpose(x, (1, 0, 2)).reshape(T * B, V)
    h = linear(h, params['emb_w'])                    # (T*B, C) f32
    for blk in params['blocks']:
        h = block_forward(h, blk, T, B)               # ln0 / ln_out fused in
    out = linear(h, params['head_w'])                 # (T*B, vocab*10)
    out = jnp.transpose(out.reshape(T, B, -1), (1, 0, 2))
    # TODO(synk): training-time cross-entropy loss path (targets) not
    # implemented; matches the PyTorch module called with targets=None.
    return out, None


# ----------------------------------------------------------------------------
# main
# ----------------------------------------------------------------------------

if __name__ == "__main__":
    vocab_size, n_embd, n_layer = 16, 512, 2   # n_embd=512 so the ffn 4C axis
    B, T = 2, 8                                # exercises >1 hidden-dim tile

    key = jax.random.PRNGKey(0)
    kx, kp = jax.random.split(key)
    params = init_params(kp, vocab_size, n_embd, n_layer)
    x = jax.random.normal(kx, (B, T, vocab_size), jnp.float32)

    logits, loss = image_gpt_forward(x, params)
    logits = jax.block_until_ready(logits)

    assert logits.shape == (B, T, vocab_size * 10), logits.shape
    assert bool(jnp.all(jnp.isfinite(logits)))
    print("KERNEL_OK")
</pallas_src>

<mosaic_0001>
module attributes {stable_mosaic.version = 11 : i64} {
  func.func @_matmul_kernel(%arg0: i32, %arg1: i32, %arg2: i32, %arg3: memref<16x128xbf16, #tpu.memory_space<vmem>>, %arg4: memref<128x512xbf16, #tpu.memory_space<vmem>>, %arg5: memref<16x512xf32, #tpu.memory_space<vmem>>, %arg6: memref<16x512xf32, #tpu.memory_space<vmem>>) attributes {dimension_semantics = [#tpu.dimension_semantics<parallel>, #tpu.dimension_semantics<parallel>, #tpu.dimension_semantics<arbitrary>], iteration_bounds = array<i64: 1, 1, 1>, scalar_prefetch = 0 : i64, scratch_operands = 1 : i64, tpu.core_type = #tpu.core_type<tc>, window_params = [{transform_indices = @transform_0, window_bounds = array<i64: 16, 128>}, {transform_indices = @transform_1, window_bounds = array<i64: 128, 512>}, {transform_indices = @transform_2, window_bounds = array<i64: 16, 512>}]} {
    %c0_i32 = arith.constant 0 : i32
    %0 = arith.cmpi eq, %arg2, %c0_i32 : i32
    %1 = arith.extui %0 : i1 to i32
    %c0_i32_0 = arith.constant 0 : i32
    %2 = arith.cmpi ne, %1, %c0_i32_0 : i32
    scf.if %2 {
      %cst_10 = arith.constant 0.000000e+00 : f32
      %12 = vector.broadcast %cst_10 : f32 to vector<16x512xf32>
      %c0_11 = arith.constant 0 : index
      %c0_12 = arith.constant 0 : index
      %13 = vector.load %arg6[%c0_11, %c0_12] : memref<16x512xf32, #tpu.memory_space<vmem>>, vector<16x512xf32>
      tpu.vector_store %arg6[%c0_11, %c0_12], %12 {strides = array<i32>} : memref<16x512xf32, #tpu.memory_space<vmem>>, vector<16x512xf32>,
    } else {
    }
    %c0 = arith.constant 0 : index
    %c0_1 = arith.constant 0 : index
    %3 = vector.load %arg6[%c0, %c0_1] : memref<16x512xf32, #tpu.memory_space<vmem>>, vector<16x512xf32>
    %c0_2 = arith.constant 0 : index
    %c0_3 = arith.constant 0 : index
    %4 = vector.load %arg3[%c0_2, %c0_3] : memref<16x128xbf16, #tpu.memory_space<vmem>>, vector<16x128xbf16>
    %c0_4 = arith.constant 0 : index
    %c0_5 = arith.constant 0 : index
    %5 = vector.load %arg4[%c0_4, %c0_5] : memref<128x512xbf16, #tpu.memory_space<vmem>>, vector<128x512xbf16>
    %cst = arith.constant dense<0.000000e+00> : vector<16x512xf32>
    %6 = tpu.matmul %4, %5, %cst {dimension_numbers = #tpu.dot_dimension_numbers<[1], [0], [0], [1], [0, 0, 1, 1], [], []>} : vector<16x128xbf16>, vector<128x512xbf16>, vector<16x512xf32> -> vector<16x512xf32>
    %7 = arith.addf %3, %6 : vector<16x512xf32>
    %c0_6 = arith.constant 0 : index
    %c0_7 = arith.constant 0 : index
    %8 = vector.load %arg6[%c0_6, %c0_7] : memref<16x512xf32, #tpu.memory_space<vmem>>, vector<16x512xf32>
    tpu.vector_store %arg6[%c0_6, %c0_7], %7 {strides = array<i32>} : memref<16x512xf32, #tpu.memory_space<vmem>>, vector<16x512xf32>,
    %c0_i32_8 = arith.constant 0 : i32
    %9 = arith.cmpi eq, %arg2, %c0_i32_8 : i32
    %10 = arith.extui %9 : i1 to i32
    %c0_i32_9 = arith.constant 0 : i32
    %11 = arith.cmpi ne, %10, %c0_i32_9 : i32
    scf.if %11 {
      %c0_10 = arith.constant 0 : index
      %c0_11 = arith.constant 0 : index
      %12 = vector.load %arg6[%c0_10, %c0_11] : memref<16x512xf32, #tpu.memory_space<vmem>>, vector<16x512xf32>
      %c0_12 = arith.constant 0 : index
      %c0_13 = arith.constant 0 : index
      %13 = vector.load %arg5[%c0_12, %c0_13] : memref<16x512xf32, #tpu.memory_space<vmem>>, vector<16x512xf32>
      tpu.vector_store %arg5[%c0_12, %c0_13], %12 {strides = array<i32>} : memref<16x512xf32, #tpu.memory_space<vmem>>, vector<16x512xf32>,
    } else {
    }
    return
  }
  func.func @transform_0(%arg0: i32, %arg1: i32, %arg2: i32) -> (i32, i32) {
    %c0_i32 = arith.constant 0 : i32
    return %arg0, %arg2 : i32, i32
  }
  func.func @transform_1(%arg0: i32, %arg1: i32, %arg2: i32) -> (i32, i32) {
    %c0_i32 = arith.constant 0 : i32
    return %arg2, %arg1 : i32, i32
  }
  func.func @transform_2(%arg0: i32, %arg1: i32, %arg2: i32) -> (i32, i32) {
    %c0_i32 = arith.constant 0 : i32
    return %arg0, %arg1 : i32, i32
  }
}

</mosaic_0001>

<bundles_post_ra>
// kernel: tpu_custom_call.1
= control target key start
LH: loop header
LB: loop body
LE: loop exit
PB: predicated region body
PF: predicated region fallthrough
CT: control target
= control target key end

     0   :  { %7 = vsyncpa [#allocation4], 0  ;;  %s592_s0 = inlined_call_operand.hbm [shape: bf16[16,128], index: 0, kind: input, shape index: {}]   ;;  %s593_s1 = inlined_call_operand.hbm [shape: bf16[128,512], index: 1, kind: input, shape index: {}]   ;;  %s594_s2 = inlined_call_operand.hbm [shape: f32[16,512], index: 2, kind: output, shape index: {}]  }
   0x1   :  { %8 = vsyncpa [#allocation7], 0 }
   0x2   :  { %9 = vsyncpa [#allocation5], 0  ;;  %s558_s9 = smov [#allocation3]  }
   0x3   :  { %s15_s10 = sshll.u32 %s558_s9, 4  ;;  %s16_s10 = int_to_ptr.vmem [resolvable:$true] %s15_s10 }
   0x4   :  { %s500_s11 = scalar_lea.vmem %s16_s10, 128  ;;  %p505_p1 = scmp.lt.s32.totalorder %s16_s10, %s16_s10 }
   0x5   :  { %p501_p0 = scmp.ne.s32.totalorder %s16_s10, %s500_s11  ;;  %p506_p2 = scmp.lt.s32.totalorder %s500_s11, %s500_s11 }
   0x7   :  { %p507_p3 = por %p506_p2, %p505_p1 }
   0x9   :  { %p508_p4 = pnand %p507_p3, %p501_p0 }
   0xb   :  { %511 = shalt.err (!%p508_p4)
}
   0xc   :  { %s559_s12 = smov 64   ;;  %s560_s13 = smov 4  }
   0xd   :  { %21 = dma.hbm_to_vmem [thread:$0]  %s592_s0, 128, %s16_s10, [#allocation4], %s559_s12, %s559_s12, %s560_s13  }
   0xe   :  { %s561_s16 = smov [#allocation6]  }
   0xf   :  { %s27_s17 = sshll.u32 %s561_s16, 4  ;;  %s28_s17 = int_to_ptr.vmem [resolvable:$true] %s27_s17 }
  0x10   :  { %s520_s18 = scalar_lea.vmem %s28_s17, 4096  ;;  %p525_p6 = scmp.lt.s32.totalorder %s28_s17, %s28_s17 }
  0x11   :  { %p521_p5 = scmp.ne.s32.totalorder %s28_s17, %s520_s18  ;;  %p526_p7 = scmp.lt.s32.totalorder %s520_s18, %s520_s18 }
  0x13   :  { %p527_p8 = por %p526_p7, %p525_p6 }
  0x15   :  { %p528_p9 = pnand %p527_p8, %p521_p5 }
  0x17   :  { %531 = shalt.err (!%p528_p9)
}
  0x18   :  { %s562_s19 = smov 256   ;;  %s563_s20 = smov 16  }
  0x19   :  { %33 = dma.hbm_to_vmem [thread:$0]  %s593_s1, 4096, %s28_s17, [#allocation7], %s562_s19, %s562_s19, %s563_s20  }
  0x1a   :  { %552 = dma.done.wait [#allocation4], 128  }
  0x1b   :  { %553 = vsyncadd [#allocation4], 4294967168 }
  0x1c   :  { %554 = dma.done.wait [#allocation7], 4096  }
  0x1d   :  { %555 = vsyncadd [#allocation7], 4294963200  ;;  %v564_v0 = vmov 0   ;;  %v443_v1 = vld [vmem:[#allocation6 + $0xe4] ss:$16 sps:$4 sm:$0xff]   ;;  %v491_v33 = vld [vmem:[#allocation3] sm:$0xff]  }
  0x1e   :  { %293 = vmatprep.mubr.bf16.mxu0 %v564_v0  ;;  %336 = vmatprep.mubr.bf16.mxu1 %v564_v0  ;;  %v445_v2 = vld [vmem:[#allocation6 + $0xec] ss:$16 sps:$4 sm:$0xff]   ;;  %v447_v3 = vld [vmem:[#allocation6 + $0xe0] ss:$16 sps:$4 sm:$0xff]   ;;  %v448_v4 = vld [vmem:[#allocation6 + $0xe8] ss:$16 sps:$4 sm:$0xff]  }
  0x1f   :  { %261 = vmatprep.subr.bf16.mxu0 %v443_v1  ;;  %304 = vmatprep.subr.bf16.mxu1 %v445_v2  ;;  %v449_v5 = vld [vmem:[#allocation6 + $0xc4] ss:$16 sps:$4 sm:$0xff]   ;;  %v451_v6 = vld [vmem:[#allocation6 + $0xcc] ss:$16 sps:$4 sm:$0xff]   ;;  %v453_v7 = vld [vmem:[#allocation6 + $0xc0] ss:$16 sps:$4 sm:$0xff]  }
  0x20   :  { %262 = vmatpush1.bf16.msra.mxu0 %v447_v3  ;;  %305 = vmatpush1.bf16.msra.mxu1 %v448_v4  ;;  %v454_v8 = vld [vmem:[#allocation6 + $0xc8] ss:$16 sps:$4 sm:$0xff]   ;;  %v455_v9 = vld [vmem:[#allocation6 + $0xa4] ss:$16 sps:$4 sm:$0xff]   ;;  %v457_v10 = vld [vmem:[#allocation6 + $0xac] ss:$16 sps:$4 sm:$0xff]  }
  0x21   :  { %263 = vmatprep.subr.bf16.mxu0 %v449_v5  ;;  %306 = vmatprep.subr.bf16.mxu1 %v451_v6  ;;  %v459_v11 = vld [vmem:[#allocation6 + $0xa0] ss:$16 sps:$4 sm:$0xff]   ;;  %v460_v12 = vld [vmem:[#allocation6 + $0xa8] ss:$16 sps:$4 sm:$0xff]   ;;  %v461_v13 = vld [vmem:[#allocation6 + $0x84] ss:$16 sps:$4 sm:$0xff]  }
  0x22   :  { %v463_v14 = vld [vmem:[#allocation6 + $0x8c] ss:$16 sps:$4 sm:$0xff]   ;;  %v465_v15 = vld [vmem:[#allocation6 + $0x80] ss:$16 sps:$4 sm:$0xff]   ;;  %v466_v16 = vld [vmem:[#allocation6 + $0x88] ss:$16 sps:$4 sm:$0xff]  }
  0x23   :  { %v467_v17 = vld [vmem:[#allocation6 + $0x64] ss:$16 sps:$4 sm:$0xff]   ;;  %v469_v18 = vld [vmem:[#allocation6 + $0x6c] ss:$16 sps:$4 sm:$0xff]   ;;  %v471_v19 = vld [vmem:[#allocation6 + $0x60] ss:$16 sps:$4 sm:$0xff]  }
  0x24   :  { %264 = vmatpush1.bf16.msra.mxu0 %v453_v7  ;;  %307 = vmatpush1.bf16.msra.mxu1 %v454_v8  ;;  %v472_v20 = vld [vmem:[#allocation6 + $0x68] ss:$16 sps:$4 sm:$0xff]   ;;  %v473_v21 = vld [vmem:[#allocation6 + $0x44] ss:$16 sps:$4 sm:$0xff]   ;;  %v475_v22 = vld [vmem:[#allocation6 + $0x4c] ss:$16 sps:$4 sm:$0xff]  }
  0x25   :  { %265 = vmatprep.subr.bf16.mxu0 %v455_v9  ;;  %308 = vmatprep.subr.bf16.mxu1 %v457_v10  ;;  %v477_v23 = vld [vmem:[#allocation6 + $0x40] ss:$16 sps:$4 sm:$0xff]   ;;  %v478_v24 = vld [vmem:[#allocation6 + $0x48] ss:$16 sps:$4 sm:$0xff]   ;;  %v479_v25 = vld [vmem:[#allocation6 + $0x24] ss:$16 sps:$4 sm:$0xff]  }
  0x26   :  { %v481_v26 = vld [vmem:[#allocation6 + $0x2c] ss:$16 sps:$4 sm:$0xff]   ;;  %v483_v27 = vld [vmem:[#allocation6 + $0x20] ss:$16 sps:$4 sm:$0xff]   ;;  %v484_v28 = vld [vmem:[#allocation6 + $0x28] ss:$16 sps:$4 sm:$0xff]  }
  0x27   :  { %v485_v29 = vld [vmem:[#allocation6 + $0x4] ss:$16 sps:$4 sm:$0xff]   ;;  %v487_v30 = vld [vmem:[#allocation6 + $0xc] ss:$16 sps:$4 sm:$0xff]   ;;  %v489_v31 = vld [vmem:[#allocation6] ss:$16 sps:$4 sm:$0xff]  }
  0x28   :  { %266 = vmatpush1.bf16.msra.mxu0 %v459_v11  ;;  %309 = vmatpush1.bf16.msra.mxu1 %v460_v12  ;;  %v490_v32 = vld [vmem:[#allocation6 + $0x8] ss:$16 sps:$4 sm:$0xff]   ;;  %s565_s0 = smov [#allocation8]  }
  0x29   :  { %267 = vmatprep.subr.bf16.mxu0 %v461_v13  ;;  %310 = vmatprep.subr.bf16.mxu1 %v463_v14  ;;  %s387_s1 = sshll.u32 %s565_s0, 4  ;;  %s388_s1 = int_to_ptr.vmem [resolvable:$true] %s387_s1 }
  0x2a   :  { %s532_s23 = scalar_lea.vmem %s388_s1, 1024  ;;  %p537_p11 = scmp.lt.s32.totalorder %s388_s1, %s388_s1 }
  0x2b   :  { %p533_p10 = scmp.ne.s32.totalorder %s388_s1, %s532_s23  ;;  %p538_p12 = scmp.lt.s32.totalorder %s532_s23, %s532_s23 }
  0x2c   :  { %268 = vmatpush1.bf16.msra.mxu0 %v465_v15  ;;  %311 = vmatpush1.bf16.msra.mxu1 %v466_v16 }
  0x2d   :  { %269 = vmatprep.subr.bf16.mxu0 %v467_v17  ;;  %312 = vmatprep.subr.bf16.mxu1 %v469_v18  ;;  %p539_p13 = por %p538_p12, %p537_p11 }
  0x2f   :  { %p540_p0 = pnand %p539_p13, %p533_p10 }
  0x30   :  { %270 = vmatpush1.bf16.msra.mxu0 %v471_v19  ;;  %313 = vmatpush1.bf16.msra.mxu1 %v472_v20 }
  0x31   :  { %271 = vmatprep.subr.bf16.mxu0 %v473_v21  ;;  %314 = vmatprep.subr.bf16.mxu1 %v475_v22 }
  0x34   :  { %272 = vmatpush1.bf16.msra.mxu0 %v477_v23  ;;  %315 = vmatpush1.bf16.msra.mxu1 %v478_v24 }
  0x35   :  { %273 = vmatprep.subr.bf16.mxu0 %v479_v25  ;;  %316 = vmatprep.subr.bf16.mxu1 %v481_v26 }
  0x38   :  { %274 = vmatpush1.bf16.msra.mxu0 %v483_v27  ;;  %317 = vmatpush1.bf16.msra.mxu1 %v484_v28 }
  0x39   :  { %275 = vmatprep.subr.bf16.mxu0 %v485_v29  ;;  %318 = vmatprep.subr.bf16.mxu1 %v487_v30 }
  0x3c   :  { %276 = vmatpush1.bf16.msra.mxu0 %v489_v31  ;;  %319 = vmatpush1.bf16.msra.mxu1 %v490_v32 }
  0x3f   :  { %294 = vmatmul.mubr.bf16.vlgmr.msra.gmra.mxu0 %v491_v33  ;;  %337 = vmatmul.mubr.bf16.vlgmr.msra.gmra.mxu1 %v491_v33 }
  0xff   :  { %v295_v34 = vpop.f32.mrf.mxu0  ;;  %v338_v35 = vpop.f32.mrf.mxu1 }
 0x100   :  { %374 = vst [vmem:[#allocation8] sm:$0xff] %v295_v34  ;;  %376 = vst [vmem:[#allocation8 + $0x10] sm:$0xff] %v338_v35 }
 0x101   :  { %v297_v36 = vpop.f32.mrf.mxu0  ;;  %v340_v37 = vpop.f32.mrf.mxu1 }
 0x102   :  { %375 = vst [vmem:[#allocation8 + $0x8] sm:$0xff] %v297_v36  ;;  %377 = vst [vmem:[#allocation8 + $0x18] sm:$0xff] %v340_v37 }
 0x103   :  { %v299_v38 = vpop.f32.mrf.mxu0  ;;  %v342_v39 = vpop.f32.mrf.mxu1 }
 0x104   :  { %378 = vst [vmem:[#allocation8 + $0x20] sm:$0xff] %v299_v38  ;;  %380 = vst [vmem:[#allocation8 + $0x30] sm:$0xff] %v342_v39 }
 0x105   :  { %v301_v40 = vpop.f32.mrf.mxu0  ;;  %v344_v41 = vpop.f32.mrf.mxu1 }
 0x106   :  { %379 = vst [vmem:[#allocation8 + $0x28] sm:$0xff] %v301_v40  ;;  %381 = vst [vmem:[#allocation8 + $0x38] sm:$0xff] %v344_v41 }
 0x107   :  { %543 = shalt.err (!%p540_p0)
}
 0x108   :  { %s566_s24 = smov 512   ;;  %s567_s25 = smov 32  }
 0x109   :  { %393 = dma.vmem_to_hbm [thread:$0]  %s388_s1, 1024, %s594_s2, [#allocation5], %s566_s24, %s566_s24, %s567_s25  }
 0x10a   :  { %556 = dma.done.wait [#allocation5], 1024  }
 0x10b   :  { %557 = vsyncadd [#allocation5], 4294966272 }
 0x10c   :  { %397 = vsyncpa [#allocation4], 1 }
 0x10d   :  { %398 = vsyncpa [#allocation7], 1 }
 0x10e   :  { %399 = vsyncpa [#allocation5], 1 }

</bundles_post_ra>
